<compile_context>
chip_gen: v5e
topology: v5e:2x2
jax: 0.10.0
libtpu: 0.0.40
codegen_flags: <defaults>
</compile_context>

<pallas_src>
import jax
import jax.numpy as jnp
from jax.experimental import pallas as pl
from jax.experimental.pallas import tpu as pltpu


def _mish(x):
    # numerically-stable softplus, then x * tanh(softplus(x))
    sp = jnp.maximum(x, 0.0) + jnp.log1p(jnp.exp(-jnp.abs(x)))
    return x * jnp.tanh(sp)


def waveblock_kernel(x_ref, w1_ref, b1_ref, wdil_ref, bdil_ref,
                     wskip_ref, bskip_ref, o_ref):
    # x_ref    : (1, Cin, L)       current batch element, channels-first
    # w1_ref   : (F, Cin)          1x1 conv weight (PyTorch (out, in) order)
    # b1_ref   : (F, 1)
    # wdil_ref : (n, 3F, K*F)      gate+tap fused dilated-conv weights
    # bdil_ref : (n, 3F, 1)
    # wskip_ref: (n, F, F)         skip 1x1 weights
    # bskip_ref: (n, F, 1)
    # o_ref    : (1, F, L)
    x_in = x_ref[0]                              # (Cin, L), L on the lane axis
    F_ = w1_ref.shape[0]
    L = x_in.shape[1]
    n = wdil_ref.shape[0]
    K = wdil_ref.shape[2] // F_
    mxu_dtype = w1_ref.dtype                     # f32 or bf16 (MXU inputs only)

    # hoisted once (broadcast_in_dim is not CSE'd by JAX)
    lane_idx = jax.lax.broadcasted_iota(jnp.int32, (F_, L), 1)

    # ---- conv1x1: pointwise conv == (F, Cin) @ (Cin, L) matmul ----
    x = jnp.dot(w1_ref[...], x_in.astype(mxu_dtype),
                preferred_element_type=jnp.float32) + b1_ref[...]    # (F, L)
    res = x

    def shifted(xv, off):
        """xv[:, l + off], zero-filled outside [0, L) — no padded copy."""
        if off == 0:
            return xv
        rolled = pltpu.roll(xv, shift=(-off) % L, axis=1)            # XLU slot
        mask = (lane_idx + off >= 0) & (lane_idx + off < L)
        return jnp.where(mask, rolled, 0.0)

    # n is small; static unroll. TODO(synk): switch to lax.fori_loop with a
    # dilation table if n grows beyond ~4 (bounds vreg live ranges).
    for i in range(n):
        d = 2 ** i
        pad = d * (K - 1) // 2
        # im2col along the sublane axis, built ONCE per layer (gates fused):
        # (K*F, L) against the fused (3F, K*F) weight -> single MXU push/layer.
        xstack = jnp.concatenate([shifted(x, j * d - pad) for j in range(K)],
                                 axis=0)
        gates = jnp.dot(wdil_ref[i], xstack.astype(mxu_dtype),
                        preferred_element_type=jnp.float32) + bdil_ref[i]  # (3F, L)
        # gated activation — lane-dense VPU/EUP work, kept in f32
        g = (jax.nn.sigmoid(gates[0:F_])
             * jnp.tanh(gates[F_:2 * F_])
             * _mish(gates[2 * F_:3 * F_]))
        # skip 1x1 + residual
        x = jnp.dot(wskip_ref[i], g.astype(mxu_dtype),
                    preferred_element_type=jnp.float32) + bskip_ref[i] + res

    o_ref[0] = x.astype(o_ref.dtype)


def waveblock_pallas(x_ncl, w1_pt, b1_pt, wdil_pt, bdil_pt, wskip_pt, bskip_pt,
                     *, weight_dtype=jnp.float32):
    """x_ncl: (B, Cin, L) exactly like PyTorch; returns (B, F, L).

    weight_dtype=jnp.bfloat16 puts the matmul inputs on the bf16 MXU path
    (f32 accumulation) — recommended for v6e/v7x at production shapes.
    """
    B, Cin, L = x_ncl.shape
    n, three, Fo, Fi, K = wdil_pt.shape
    assert three == 3 and Fo == Fi
    F_ = Fo
    # 'same' padding formula only matches PyTorch semantics for odd K
    assert K % 2 == 1, "kernel_size must be odd"

    # ---- weight prep: PyTorch conv layouts -> kernel layouts ----
    w1 = w1_pt[:, :, 0].astype(weight_dtype)                          # (F, Cin)
    b1 = b1_pt.reshape(F_, 1).astype(jnp.float32)
    # (n, 3, F_out, F_in, K) -> (n, 3, F_out, K, F_in) -> (n, 3F, K*F)
    wdil = jnp.transpose(wdil_pt, (0, 1, 2, 4, 3)) \
              .reshape(n, 3 * F_, K * F_).astype(weight_dtype)
    bdil = bdil_pt.reshape(n, 3 * F_, 1).astype(jnp.float32)
    wskip = wskip_pt[:, :, :, 0].astype(weight_dtype)                 # (n, F, F)
    bskip = bskip_pt.reshape(n, F_, 1).astype(jnp.float32)

    x = x_ncl.astype(jnp.float32)                                     # (B, Cin, L)

    flops = 2 * B * L * (Cin * F_ + n * (3 * F_ * K * F_ + F_ * F_))
    transcendentals = 5 * n * B * F_ * L
    bytes_accessed = int(
        x.size * 4 + B * F_ * L * 4
        + (w1.size + wdil.size + wskip.size) * jnp.dtype(weight_dtype).itemsize
        + (b1.size + bdil.size + bskip.size) * 4)

    out = pl.pallas_call(
        waveblock_kernel,
        out_shape=jax.ShapeDtypeStruct((B, F_, L), jnp.float32),
        grid_spec=pltpu.PrefetchScalarGridSpec(
            num_scalar_prefetch=0,
            grid=(B,),
            in_specs=[
                pl.BlockSpec((1, Cin, L), lambda b: (b, 0, 0)),
                pl.BlockSpec((F_, Cin), lambda b: (0, 0)),
                pl.BlockSpec((F_, 1), lambda b: (0, 0)),
                pl.BlockSpec((n, 3 * F_, K * F_), lambda b: (0, 0, 0)),
                pl.BlockSpec((n, 3 * F_, 1), lambda b: (0, 0, 0)),
                pl.BlockSpec((n, F_, F_), lambda b: (0, 0, 0)),
                pl.BlockSpec((n, F_, 1), lambda b: (0, 0, 0)),
            ],
            out_specs=pl.BlockSpec((1, F_, L), lambda b: (b, 0, 0)),
        ),
        compiler_params=pltpu.CompilerParams(
            dimension_semantics=("parallel",),
            vmem_limit_bytes=32 * 1024 * 1024),
        cost_estimate=pl.CostEstimate(flops=flops,
                                      transcendentals=transcendentals,
                                      bytes_accessed=bytes_accessed),
    )(x, w1, b1, wdil, bdil, wskip, bskip)

    return out                                                        # (B, F, L)


# ---------------- pure-JAX reference (mirrors the PyTorch forward) -------------
def _conv1d_ref(x, w, b, dilation=1, padding=0):
    y = jax.lax.conv_general_dilated(
        x, w, window_strides=(1,), padding=[(padding, padding)],
        rhs_dilation=(dilation,), dimension_numbers=("NCH", "OIH", "NCH"))
    return y + b[None, :, None]


def waveblock_ref(x, w1, b1, wdil, bdil, wskip, bskip, kernel_size, n):
    x = _conv1d_ref(x, w1, b1)
    res = x
    for i in range(n):
        d = 2 ** i
        pad = int(d * (kernel_size - 1) / 2)
        x1 = _conv1d_ref(x, wdil[i, 0], bdil[i, 0], d, pad)
        x2 = _conv1d_ref(x, wdil[i, 1], bdil[i, 1], d, pad)
        x3 = _conv1d_ref(x, wdil[i, 2], bdil[i, 2], d, pad)
        xg = jax.nn.sigmoid(x1) * jnp.tanh(x2) * (x3 * jnp.tanh(jax.nn.softplus(x3)))
        x = _conv1d_ref(xg, wskip[i], bskip[i])
        x = x + res
    return x


if __name__ == "__main__":
    B, Cin, L = 2, 4, 16          # batch, in_channels, sequence length
    F_, K, N = 8, 3, 2            # filters, kernel_size, n (dilation levels)

    key = jax.random.PRNGKey(0)
    ks = jax.random.split(key, 7)
    w1_pt = 0.1 * jax.random.normal(ks[0], (F_, Cin, 1), jnp.float32)
    b1_pt = 0.1 * jax.random.normal(ks[1], (F_,), jnp.float32)
    wdil_pt = 0.1 * jax.random.normal(ks[2], (N, 3, F_, F_, K), jnp.float32)
    bdil_pt = 0.1 * jax.random.normal(ks[3], (N, 3, F_), jnp.float32)
    wskip_pt = 0.1 * jax.random.normal(ks[4], (N, F_, F_, 1), jnp.float32)
    bskip_pt = 0.1 * jax.random.normal(ks[5], (N, F_), jnp.float32)
    x = jax.random.normal(ks[6], (B, Cin, L), jnp.float32)

    run = jax.jit(waveblock_pallas)
    out = run(x, w1_pt, b1_pt, wdil_pt, bdil_pt, wskip_pt, bskip_pt)
    out = jax.block_until_ready(out)

    ref = waveblock_ref(x, w1_pt, b1_pt, wdil_pt, bdil_pt, wskip_pt, bskip_pt, K, N)
    ref = jax.block_until_ready(ref)

    assert out.shape == (B, F_, L), out.shape
    assert jnp.allclose(out, ref, rtol=1e-4, atol=1e-4), \
        f"max err {jnp.max(jnp.abs(out - ref))}"
    print("KERNEL_OK")
</pallas_src>

<mosaic_0001>
module attributes {stable_mosaic.version = 11 : i64} {
  func.func @waveblock_kernel(%arg0: i32, %arg1: memref<1x4x16xf32, #tpu.memory_space<vmem>>, %arg2: memref<8x4xf32, #tpu.memory_space<vmem>>, %arg3: memref<8x1xf32, #tpu.memory_space<vmem>>, %arg4: memref<2x24x24xf32, #tpu.memory_space<vmem>>, %arg5: memref<2x24x1xf32, #tpu.memory_space<vmem>>, %arg6: memref<2x8x8xf32, #tpu.memory_space<vmem>>, %arg7: memref<2x8x1xf32, #tpu.memory_space<vmem>>, %arg8: memref<1x8x16xf32, #tpu.memory_space<vmem>>) attributes {dimension_semantics = [#tpu.dimension_semantics<parallel>], iteration_bounds = array<i64: 2>, scalar_prefetch = 0 : i64, scratch_operands = 0 : i64, tpu.core_type = #tpu.core_type<tc>, window_params = [{transform_indices = @transform_0, window_bounds = array<i64: 1, 4, 16>}, {pipeline_mode = #tpu.pipeline_mode<synchronous>, transform_indices = @transform_1, window_bounds = array<i64: 8, 4>}, {pipeline_mode = #tpu.pipeline_mode<synchronous>, transform_indices = @transform_2, window_bounds = array<i64: 8, 1>}, {pipeline_mode = #tpu.pipeline_mode<synchronous>, transform_indices = @transform_3, window_bounds = array<i64: 2, 24, 24>}, {pipeline_mode = #tpu.pipeline_mode<synchronous>, transform_indices = @transform_4, window_bounds = array<i64: 2, 24, 1>}, {pipeline_mode = #tpu.pipeline_mode<synchronous>, transform_indices = @transform_5, window_bounds = array<i64: 2, 8, 8>}, {pipeline_mode = #tpu.pipeline_mode<synchronous>, transform_indices = @transform_6, window_bounds = array<i64: 2, 8, 1>}, {transform_indices = @transform_7, window_bounds = array<i64: 1, 8, 16>}]} {
    %c0 = arith.constant 0 : index
    %c0_0 = arith.constant 0 : index
    %c0_1 = arith.constant 0 : index
    %0 = vector.load %arg1[%c0, %c0_0, %c0_1] : memref<1x4x16xf32, #tpu.memory_space<vmem>>, vector<1x4x16xf32>
    %1 = vector.shape_cast %0 : vector<1x4x16xf32> to vector<4x16xf32>
    %2 = tpu.iota {dimensions = array<i32: 1>} : vector<8x16xi32>
    %c0_2 = arith.constant 0 : index
    %c0_3 = arith.constant 0 : index
    %3 = vector.load %arg2[%c0_2, %c0_3] : memref<8x4xf32, #tpu.memory_space<vmem>>, vector<8x4xf32>
    %cst = arith.constant dense<0.000000e+00> : vector<8x16xf32>
    %4 = tpu.matmul %3, %1, %cst {dimension_numbers = #tpu.dot_dimension_numbers<[1], [0], [0], [1], [0, 0, 1, 1], [], []>} : vector<8x4xf32>, vector<4x16xf32>, vector<8x16xf32> -> vector<8x16xf32>
    %c0_4 = arith.constant 0 : index
    %c0_5 = arith.constant 0 : index
    %5 = vector.load %arg3[%c0_4, %c0_5] : memref<8x1xf32, #tpu.memory_space<vmem>>, vector<8x1xf32>
    %6 = vector.broadcast %5 : vector<8x1xf32> to vector<8x16xf32>
    %7 = arith.addf %4, %6 : vector<8x16xf32>
    %c1_i32 = arith.constant 1 : i32
    %8 = tpu.dynamic_rotate %7 by %c1_i32 dim 1 : vector<8x16xf32>, i32 -> vector<8x16xf32>
    %c-1_i32 = arith.constant -1 : i32
    %9 = vector.broadcast %c-1_i32 : i32 to vector<8x16xi32>
    %10 = arith.addi %2, %9 : vector<8x16xi32>
    %c0_i32 = arith.constant 0 : i32
    %11 = vector.broadcast %c0_i32 : i32 to vector<8x16xi32>
    %12 = arith.cmpi sge, %10, %11 : vector<8x16xi32>
    %c-1_i32_6 = arith.constant -1 : i32
    %13 = vector.broadcast %c-1_i32_6 : i32 to vector<8x16xi32>
    %14 = arith.addi %2, %13 : vector<8x16xi32>
    %c16_i32 = arith.constant 16 : i32
    %15 = vector.broadcast %c16_i32 : i32 to vector<8x16xi32>
    %16 = arith.cmpi slt, %14, %15 : vector<8x16xi32>
    %17 = arith.andi %12, %16 : vector<8x16xi1>
    %cst_7 = arith.constant 0.000000e+00 : f32
    %18 = vector.broadcast %cst_7 : f32 to vector<8x16xf32>
    %19 = arith.select %17, %8, %18 : vector<8x16xi1>, vector<8x16xf32>
    %c15_i32 = arith.constant 15 : i32
    %20 = tpu.dynamic_rotate %7 by %c15_i32 dim 1 : vector<8x16xf32>, i32 -> vector<8x16xf32>
    %c1_i32_8 = arith.constant 1 : i32
    %21 = vector.broadcast %c1_i32_8 : i32 to vector<8x16xi32>
    %22 = arith.addi %2, %21 : vector<8x16xi32>
    %c0_i32_9 = arith.constant 0 : i32
    %23 = vector.broadcast %c0_i32_9 : i32 to vector<8x16xi32>
    %24 = arith.cmpi sge, %22, %23 : vector<8x16xi32>
    %c1_i32_10 = arith.constant 1 : i32
    %25 = vector.broadcast %c1_i32_10 : i32 to vector<8x16xi32>
    %26 = arith.addi %2, %25 : vector<8x16xi32>
    %c16_i32_11 = arith.constant 16 : i32
    %27 = vector.broadcast %c16_i32_11 : i32 to vector<8x16xi32>
    %28 = arith.cmpi slt, %26, %27 : vector<8x16xi32>
    %29 = arith.andi %24, %28 : vector<8x16xi1>
    %cst_12 = arith.constant 0.000000e+00 : f32
    %30 = vector.broadcast %cst_12 : f32 to vector<8x16xf32>
    %31 = arith.select %29, %20, %30 : vector<8x16xi1>, vector<8x16xf32>
    %32 = tpu.concatenate %19, %7, %31 in 0 : vector<8x16xf32>, vector<8x16xf32>, vector<8x16xf32> -> vector<24x16xf32>
    %c0_13 = arith.constant 0 : index
    %c0_14 = arith.constant 0 : index
    %c0_15 = arith.constant 0 : index
    %33 = vector.load %arg4[%c0_13, %c0_14, %c0_15] : memref<2x24x24xf32, #tpu.memory_space<vmem>>, vector<1x24x24xf32>
    %34 = vector.shape_cast %33 : vector<1x24x24xf32> to vector<24x24xf32>
    %cst_16 = arith.constant dense<0.000000e+00> : vector<24x16xf32>
    %35 = tpu.matmul %34, %32, %cst_16 {dimension_numbers = #tpu.dot_dimension_numbers<[1], [0], [0], [1], [0, 0, 1, 1], [], []>} : vector<24x24xf32>, vector<24x16xf32>, vector<24x16xf32> -> vector<24x16xf32>
    %c0_17 = arith.constant 0 : index
    %c0_18 = arith.constant 0 : index
    %c0_19 = arith.constant 0 : index
    %36 = vector.load %arg5[%c0_17, %c0_18, %c0_19] : memref<2x24x1xf32, #tpu.memory_space<vmem>>, vector<1x24x1xf32>
    %37 = vector.shape_cast %36 : vector<1x24x1xf32> to vector<24x1xf32>
    %38 = vector.broadcast %37 : vector<24x1xf32> to vector<24x16xf32>
    %39 = arith.addf %35, %38 : vector<24x16xf32>
    %40 = vector.extract_strided_slice %39 {offsets = [0, 0], sizes = [8, 16], strides = [1, 1]} : vector<24x16xf32> to vector<8x16xf32>
    %41 = arith.negf %40 : vector<8x16xf32>
    %42 = math.exp %41 : vector<8x16xf32>
    %cst_20 = arith.constant 1.000000e+00 : f32
    %43 = vector.broadcast %cst_20 : f32 to vector<8x16xf32>
    %44 = arith.addf %43, %42 : vector<8x16xf32>
    %45 = arith.divf %43, %44 : vector<8x16xf32>
    %46 = vector.extract_strided_slice %39 {offsets = [8, 0], sizes = [8, 16], strides = [1, 1]} : vector<24x16xf32> to vector<8x16xf32>
    %47 = math.tanh %46 : vector<8x16xf32>
    %48 = arith.mulf %45, %47 : vector<8x16xf32>
    %49 = vector.extract_strided_slice %39 {offsets = [16, 0], sizes = [8, 16], strides = [1, 1]} : vector<24x16xf32> to vector<8x16xf32>
    %cst_21 = arith.constant 0.000000e+00 : f32
    %50 = vector.broadcast %cst_21 : f32 to vector<8x16xf32>
    %51 = arith.maximumf %49, %50 : vector<8x16xf32>
    %52 = math.absf %49 : vector<8x16xf32>
    %cst_22 = arith.constant 0.000000e+00 : f32
    %53 = vector.broadcast %cst_22 : f32 to vector<8x16xf32>
    %54 = arith.subf %53, %52 : vector<8x16xf32>
    %55 = math.exp %54 : vector<8x16xf32>
    %56 = math.log1p %55 : vector<8x16xf32>
    %57 = arith.addf %51, %56 : vector<8x16xf32>
    %58 = math.tanh %57 : vector<8x16xf32>
    %59 = arith.mulf %49, %58 : vector<8x16xf32>
    %60 = arith.mulf %48, %59 : vector<8x16xf32>
    %c0_23 = arith.constant 0 : index
    %c0_24 = arith.constant 0 : index
    %c0_25 = arith.constant 0 : index
    %61 = vector.load %arg6[%c0_23, %c0_24, %c0_25] : memref<2x8x8xf32, #tpu.memory_space<vmem>>, vector<1x8x8xf32>
    %62 = vector.shape_cast %61 : vector<1x8x8xf32> to vector<8x8xf32>
    %cst_26 = arith.constant dense<0.000000e+00> : vector<8x16xf32>
    %63 = tpu.matmul %62, %60, %cst_26 {dimension_numbers = #tpu.dot_dimension_numbers<[1], [0], [0], [1], [0, 0, 1, 1], [], []>} : vector<8x8xf32>, vector<8x16xf32>, vector<8x16xf32> -> vector<8x16xf32>
    %c0_27 = arith.constant 0 : index
    %c0_28 = arith.constant 0 : index
    %c0_29 = arith.constant 0 : index
    %64 = vector.load %arg7[%c0_27, %c0_28, %c0_29] : memref<2x8x1xf32, #tpu.memory_space<vmem>>, vector<1x8x1xf32>
    %65 = vector.shape_cast %64 : vector<1x8x1xf32> to vector<8x1xf32>
    %66 = vector.broadcast %65 : vector<8x1xf32> to vector<8x16xf32>
    %67 = arith.addf %63, %66 : vector<8x16xf32>
    %68 = arith.addf %67, %7 : vector<8x16xf32>
    %c2_i32 = arith.constant 2 : i32
    %69 = tpu.dynamic_rotate %68 by %c2_i32 dim 1 : vector<8x16xf32>, i32 -> vector<8x16xf32>
    %c-2_i32 = arith.constant -2 : i32
    %70 = vector.broadcast %c-2_i32 : i32 to vector<8x16xi32>
    %71 = arith.addi %2, %70 : vector<8x16xi32>
    %c0_i32_30 = arith.constant 0 : i32
    %72 = vector.broadcast %c0_i32_30 : i32 to vector<8x16xi32>
    %73 = arith.cmpi sge, %71, %72 : vector<8x16xi32>
    %c-2_i32_31 = arith.constant -2 : i32
    %74 = vector.broadcast %c-2_i32_31 : i32 to vector<8x16xi32>
    %75 = arith.addi %2, %74 : vector<8x16xi32>
    %c16_i32_32 = arith.constant 16 : i32
    %76 = vector.broadcast %c16_i32_32 : i32 to vector<8x16xi32>
    %77 = arith.cmpi slt, %75, %76 : vector<8x16xi32>
    %78 = arith.andi %73, %77 : vector<8x16xi1>
    %cst_33 = arith.constant 0.000000e+00 : f32
    %79 = vector.broadcast %cst_33 : f32 to vector<8x16xf32>
    %80 = arith.select %78, %69, %79 : vector<8x16xi1>, vector<8x16xf32>
    %c14_i32 = arith.constant 14 : i32
    %81 = tpu.dynamic_rotate %68 by %c14_i32 dim 1 : vector<8x16xf32>, i32 -> vector<8x16xf32>
    %c2_i32_34 = arith.constant 2 : i32
    %82 = vector.broadcast %c2_i32_34 : i32 to vector<8x16xi32>
    %83 = arith.addi %2, %82 : vector<8x16xi32>
    %c0_i32_35 = arith.constant 0 : i32
    %84 = vector.broadcast %c0_i32_35 : i32 to vector<8x16xi32>
    %85 = arith.cmpi sge, %83, %84 : vector<8x16xi32>
    %c2_i32_36 = arith.constant 2 : i32
    %86 = vector.broadcast %c2_i32_36 : i32 to vector<8x16xi32>
    %87 = arith.addi %2, %86 : vector<8x16xi32>
    %c16_i32_37 = arith.constant 16 : i32
    %88 = vector.broadcast %c16_i32_37 : i32 to vector<8x16xi32>
    %89 = arith.cmpi slt, %87, %88 : vector<8x16xi32>
    %90 = arith.andi %85, %89 : vector<8x16xi1>
    %cst_38 = arith.constant 0.000000e+00 : f32
    %91 = vector.broadcast %cst_38 : f32 to vector<8x16xf32>
    %92 = arith.select %90, %81, %91 : vector<8x16xi1>, vector<8x16xf32>
    %93 = tpu.concatenate %80, %68, %92 in 0 : vector<8x16xf32>, vector<8x16xf32>, vector<8x16xf32> -> vector<24x16xf32>
    %c1 = arith.constant 1 : index
    %c0_39 = arith.constant 0 : index
    %c0_40 = arith.constant 0 : index
    %94 = vector.load %arg4[%c1, %c0_39, %c0_40] : memref<2x24x24xf32, #tpu.memory_space<vmem>>, vector<1x24x24xf32>
    %95 = vector.shape_cast %94 : vector<1x24x24xf32> to vector<24x24xf32>
    %cst_41 = arith.constant dense<0.000000e+00> : vector<24x16xf32>
    %96 = tpu.matmul %95, %93, %cst_41 {dimension_numbers = #tpu.dot_dimension_numbers<[1], [0], [0], [1], [0, 0, 1, 1], [], []>} : vector<24x24xf32>, vector<24x16xf32>, vector<24x16xf32> -> vector<24x16xf32>
    %c1_42 = arith.constant 1 : index
    %c0_43 = arith.constant 0 : index
    %c0_44 = arith.constant 0 : index
    %97 = vector.load %arg5[%c1_42, %c0_43, %c0_44] : memref<2x24x1xf32, #tpu.memory_space<vmem>>, vector<1x24x1xf32>
    %98 = vector.shape_cast %97 : vector<1x24x1xf32> to vector<24x1xf32>
    %99 = vector.broadcast %98 : vector<24x1xf32> to vector<24x16xf32>
    %100 = arith.addf %96, %99 : vector<24x16xf32>
    %101 = vector.extract_strided_slice %100 {offsets = [0, 0], sizes = [8, 16], strides = [1, 1]} : vector<24x16xf32> to vector<8x16xf32>
    %102 = arith.negf %101 : vector<8x16xf32>
    %103 = math.exp %102 : vector<8x16xf32>
    %cst_45 = arith.constant 1.000000e+00 : f32
    %104 = vector.broadcast %cst_45 : f32 to vector<8x16xf32>
    %105 = arith.addf %104, %103 : vector<8x16xf32>
    %106 = arith.divf %104, %105 : vector<8x16xf32>
    %107 = vector.extract_strided_slice %100 {offsets = [8, 0], sizes = [8, 16], strides = [1, 1]} : vector<24x16xf32> to vector<8x16xf32>
    %108 = math.tanh %107 : vector<8x16xf32>
    %109 = arith.mulf %106, %108 : vector<8x16xf32>
    %110 = vector.extract_strided_slice %100 {offsets = [16, 0], sizes = [8, 16], strides = [1, 1]} : vector<24x16xf32> to vector<8x16xf32>
    %cst_46 = arith.constant 0.000000e+00 : f32
    %111 = vector.broadcast %cst_46 : f32 to vector<8x16xf32>
    %112 = arith.maximumf %110, %111 : vector<8x16xf32>
    %113 = math.absf %110 : vector<8x16xf32>
    %cst_47 = arith.constant 0.000000e+00 : f32
    %114 = vector.broadcast %cst_47 : f32 to vector<8x16xf32>
    %115 = arith.subf %114, %113 : vector<8x16xf32>
    %116 = math.exp %115 : vector<8x16xf32>
    %117 = math.log1p %116 : vector<8x16xf32>
    %118 = arith.addf %112, %117 : vector<8x16xf32>
    %119 = math.tanh %118 : vector<8x16xf32>
    %120 = arith.mulf %110, %119 : vector<8x16xf32>
    %121 = arith.mulf %109, %120 : vector<8x16xf32>
    %c1_48 = arith.constant 1 : index
    %c0_49 = arith.constant 0 : index
    %c0_50 = arith.constant 0 : index
    %122 = vector.load %arg6[%c1_48, %c0_49, %c0_50] : memref<2x8x8xf32, #tpu.memory_space<vmem>>, vector<1x8x8xf32>
    %123 = vector.shape_cast %122 : vector<1x8x8xf32> to vector<8x8xf32>
    %cst_51 = arith.constant dense<0.000000e+00> : vector<8x16xf32>
    %124 = tpu.matmul %123, %121, %cst_51 {dimension_numbers = #tpu.dot_dimension_numbers<[1], [0], [0], [1], [0, 0, 1, 1], [], []>} : vector<8x8xf32>, vector<8x16xf32>, vector<8x16xf32> -> vector<8x16xf32>
    %c1_52 = arith.constant 1 : index
    %c0_53 = arith.constant 0 : index
    %c0_54 = arith.constant 0 : index
    %125 = vector.load %arg7[%c1_52, %c0_53, %c0_54] : memref<2x8x1xf32, #tpu.memory_space<vmem>>, vector<1x8x1xf32>
    %126 = vector.shape_cast %125 : vector<1x8x1xf32> to vector<8x1xf32>
    %127 = vector.broadcast %126 : vector<8x1xf32> to vector<8x16xf32>
    %128 = arith.addf %124, %127 : vector<8x16xf32>
    %129 = arith.addf %128, %7 : vector<8x16xf32>
    %c0_55 = arith.constant 0 : index
    %c0_56 = arith.constant 0 : index
    %c0_57 = arith.constant 0 : index
    %130 = vector.load %arg8[%c0_55, %c0_56, %c0_57] : memref<1x8x16xf32, #tpu.memory_space<vmem>>, vector<1x8x16xf32>
    %131 = vector.shape_cast %130 : vector<1x8x16xf32> to vector<8x16xf32>
    %132 = vector.shape_cast %129 : vector<8x16xf32> to vector<1x8x16xf32>
    tpu.vector_store %arg8[%c0_55, %c0_56, %c0_57], %132 {strides = array<i32>} : memref<1x8x16xf32, #tpu.memory_space<vmem>>, vector<1x8x16xf32>,
    return
  }
  func.func @transform_0(%arg0: i32) -> (i32, i32, i32) {
    %c0_i32 = arith.constant 0 : i32
    %c0_i32_0 = arith.constant 0 : i32
    %c0_i32_1 = arith.constant 0 : i32
    return %arg0, %c0_i32, %c0_i32_0 : i32, i32, i32
  }
  func.func @transform_1(%arg0: i32) -> (i32, i32) {
    %c0_i32 = arith.constant 0 : i32
    %c0_i32_0 = arith.constant 0 : i32
    %c0_i32_1 = arith.constant 0 : i32
    return %c0_i32, %c0_i32_0 : i32, i32
  }
  func.func @transform_2(%arg0: i32) -> (i32, i32) {
    %c0_i32 = arith.constant 0 : i32
    %c0_i32_0 = arith.constant 0 : i32
    %c0_i32_1 = arith.constant 0 : i32
    return %c0_i32, %c0_i32_0 : i32, i32
  }
  func.func @transform_3(%arg0: i32) -> (i32, i32, i32) {
    %c0_i32 = arith.constant 0 : i32
    %c0_i32_0 = arith.constant 0 : i32
    %c0_i32_1 = arith.constant 0 : i32
    %c0_i32_2 = arith.constant 0 : i32
    return %c0_i32, %c0_i32_0, %c0_i32_1 : i32, i32, i32
  }
  func.func @transform_4(%arg0: i32) -> (i32, i32, i32) {
    %c0_i32 = arith.constant 0 : i32
    %c0_i32_0 = arith.constant 0 : i32
    %c0_i32_1 = arith.constant 0 : i32
    %c0_i32_2 = arith.constant 0 : i32
    return %c0_i32, %c0_i32_0, %c0_i32_1 : i32, i32, i32
  }
  func.func @transform_5(%arg0: i32) -> (i32, i32, i32) {
    %c0_i32 = arith.constant 0 : i32
    %c0_i32_0 = arith.constant 0 : i32
    %c0_i32_1 = arith.constant 0 : i32
    %c0_i32_2 = arith.constant 0 : i32
    return %c0_i32, %c0_i32_0, %c0_i32_1 : i32, i32, i32
  }
  func.func @transform_6(%arg0: i32) -> (i32, i32, i32) {
    %c0_i32 = arith.constant 0 : i32
    %c0_i32_0 = arith.constant 0 : i32
    %c0_i32_1 = arith.constant 0 : i32
    %c0_i32_2 = arith.constant 0 : i32
    return %c0_i32, %c0_i32_0, %c0_i32_1 : i32, i32, i32
  }
  func.func @transform_7(%arg0: i32) -> (i32, i32, i32) {
    %c0_i32 = arith.constant 0 : i32
    %c0_i32_0 = arith.constant 0 : i32
    %c0_i32_1 = arith.constant 0 : i32
    return %arg0, %c0_i32, %c0_i32_0 : i32, i32, i32
  }
}

</mosaic_0001>

<bundles_post_ra>
// kernel: waveblock_pallas.1
= control target key start
LH: loop header
LB: loop body
LE: loop exit
PB: predicated region body
PF: predicated region fallthrough
CT: control target
= control target key end

     0   :  { %12 = vsyncpa [#allocation3], 0  ;;  %s1079_s0 = inlined_call_operand.vmem [shape: f32[2,4,16], index: 0, kind: input, shape index: {}]   ;;  %s1080_s1 = inlined_call_operand.vmem [shape: f32[8,4], index: 1, kind: input, shape index: {}]   ;;  %s1081_s2 = inlined_call_operand.vmem [shape: f32[8,1], index: 2, kind: input, shape index: {}]   ;;  %s1082_s3 = inlined_call_operand.vmem [shape: f32[2,24,24], index: 3, kind: input, shape index: {}]   ;;  %s1083_s4 = inlined_call_operand.vmem [shape: f32[2,24,1], index: 4, kind: input, shape index: {}]   ;;  %s1084_s5 = inlined_call_operand.vmem [shape: f32[2,8,8], index: 5, kind: input, shape index: {}]   ;;  %s1085_s6 = inlined_call_operand.vmem [shape: f32[2,8,1], index: 6, kind: input, shape index: {}]   ;;  %s1086_s7 = inlined_call_operand.hbm [shape: f32[2,8,16], index: 7, kind: output, shape index: {}]  }
   0x1   :  { %14 = vsyncpa [#allocation3 + $0x1], 0  ;;  %s910_s24 = smov 0   ;;  %s912_s25 = smov 0  }
   0x2   :  { %s914_s26 = smov 0   ;;  %s916_s27 = smov 0  }
   0x3 LB: > { %s931_s28 = sadd.s32 4294967295, %s862_s27   ;;  %s694_s29 = sadd.s32 4294967294, %s862_s27   ;;  %s862_s27 = sphi %s916_s27, %s1092_s27   ;;  %s858_s26 = sphi %s914_s26, %s1091_s26   ;;  %s854_s25 = sphi %s912_s25, %s1090_s25   ;;  %s850_s24 = sphi %s910_s24, %s1089_s24  }
   0x4   : > { %s935_s30 = sadd.s32 1, %s862_s27   ;;  %s179_s8 = sadd.s32 1, %s858_s26 }
   0x5   : > { %s176_s9 = ssub.s32 %s862_s27, %s935_s30  ;;  %p189_p0 = scmp.ne.s32.totalorder %s858_s26, %s854_s25 }
   0x6   : > { %p177_p1 = scmp.eq.s32.totalorder %s176_s9, 0  ;;  %p190_p2 = scmp.eq.s32.totalorder %s931_s28, 1 }
   0x7   : > { %p195_p3 = scmp.ne.s32.totalorder %s854_s25, %s850_s24  ;;  %p196_p4 = scmp.eq.s32.totalorder %s694_s29, 1 }
   0x8   : > { %s946_s10 = scalar_select %p177_p1, %s858_s26, %s179_s8  }
   0x9   : > { %p948_p5 = por %p190_p2, %p189_p0  ;;  %p952_p6 = por %p196_p4, %p195_p3 }
   0xa   : > { %p697_p7 = scmp.ge.s32.totalorder %s862_s27, 1  ;;  %p239_p8 = scmp.lt.s32.totalorder %s862_s27, 3 }
   0xc   : > { %p240_p9 = pnand %p697_p7, %p239_p8 }
   0xd   : > { %p270_p10 = scmp.lt.s32.totalorder (!%p240_p9), %s931_s28, 1  ;;  %s865_s22 = smov (!%p240_p9), 16  }
   0xe   : > { %243 = sbr.rel (%p240_p9) target bundleno = 1494 (0x5d6), region = 48  ;;  %s866_s8 = smov (!%p240_p9), 113  }
   0xf   : > { %s867_s9 = smov (!%p240_p9), 127   ;;  %s868_s18 = smov (!%p240_p9), 114  }
  0x10   : > { %s725_s20 = sshll.u32 (!%p240_p9), %s931_s28, 3  ;;  %s820_s17 = scalar_lea.hbm (!%p240_p9), %s1086_s7, 16 }
  0x11   : > { %s630_s23 = scalar_lea.hbm (!%p240_p9), %s1086_s7, %s725_s20 }
  0x13   : > { %v278_v0 = vld [vmem:[%s1081_s2] sm:$0xff]  ;;  %v864_v1 = vmov 0   ;;  %s271_s15 = scalar_select %p270_p10, %s931_s28, 1  ;;  %vm288_vm0 = vcmask 1043456   ;;  %vm284_vm1 = vcmask 31744   ;;  %vm312_vm2 = vcmask 1047680  }
  0x14   : > { %773 = vset.pattern.permute.xlu0 %v864_v1  ;;  %775 = vset.pattern.permute.xlu1 %v864_v1  ;;  %v277_v2 = vld [vmem:[%s1080_s1] sm:$0xff]  ;;  %v275_v12 = vlaneseq  ;;  %v340_v14 = vld [vmem:[%s1083_s4 + $0x8] sm:$0xff]  ;;  %v341_v15 = vld [vmem:[%s1083_s4 + $0x10] sm:$0xff]  ;;  %vm357_vm7 = vcmask 195584   ;;  %vm439_vm13 = vcmask 64512  }
  0x15   : > { %281 = vperm.xlu0 %773, %v278_v0   ;;  %774 = vset.pattern.permute.xlu2 %v864_v1  ;;  %s699_s16 = sshll.u32 %s271_s15, 2  ;;  %v339_v7 = vld [vmem:[%s1083_s4] sm:$0xff]  ;;  %v337_v22 = vld [vmem:[%s1082_s3 + $0x8] sm:$0xff]  ;;  %v338_v23 = vld [vmem:[%s1082_s3 + $0x10] sm:$0xff] }
  0x16   : > { %s273_s19 = scalar_lea.vmem %s1079_s0, %s699_s16  ;;  %v981_v13 = vand.u32 127, %v275_v12  ;;  %v433_v18 = vld [vmem:[%s1085_s6] sm:$0xff] }
  0x17   : > { %v274_v3 = vld [vmem:[%s273_s19] sm:$0xf]  ;;  %s869_s19 = smov 126  }
  0x18   : > { %700 = vmatpush.msk.msra.mxu0 %vm288_vm0, %v274_v3  ;;  %v328_v16 = vadd.s32 1, %v981_v13  ;;  %v319_v17 = vadd.s32 4294967295, %v981_v13  ;;  %v336_v20 = vld [vmem:[%s1082_s3] sm:$0xff] }
  0x19   : > { %701 = vmatmul.msk.f32.vlgmr.msra.gmra.mxu0 %vm284_vm1, %v277_v2  ;;  %v432_v1 = vld [vmem:[%s1084_s5] sm:$0xff] }
  0x1a   : > { %vm330_vm3 = vcmp.lt.s32.totalorder %v328_v16, 16  ;;  %vm320_vm4 = vcmp.ge.s32.totalorder %v319_v17, 0  ;;  %vm321_vm5 = vcmp.lt.s32.totalorder %v319_v17, 16  ;;  %v479_v16 = vadd.s32 2, %v981_v13 }
  0x1b   : > { %vm322_vm6 = vmand %vm320_vm4, %vm321_vm5 }
  0x1c   : > { %vm481_vm14 = vcmp.lt.s32.totalorder %v479_v16, 16 }
  0x87   : > { %v282_v4 = vpop.permute.xlu0 %281 }
  0x96   : > { %v309_v5 = vpop.f32.mrf.mxu0 }
  0x97   : > { %v969_v6 = vadd.f32 %v309_v5, %v282_v4 }
  0x99   : > { %313 = vrot.lane.b32.xlu0 %v969_v6, %s865_s22 }
  0xa1   : > { %344 = vperm.xlu0 %773, %v339_v7  }
 0x10b   : > { %v314_v8 = vpop.permute.xlu0 %313 }
 0x10c   : > { %v315_v9 = vsel %vm312_vm2, %v314_v8, %v969_v6 }
 0x10d   : > { %316 = vrot.lane.b32.xlu1 %v315_v9, %s865_s22  ;;  %v714_v9 = vld [vmem:[%s1083_s4 + $0x28] sm:$0xff] }
 0x113   : > { %v345_v24 = vpop.permute.xlu0 %344 }
 0x17f   : > { %v317_v10 = vpop.permute.xlu1 %316 }
 0x180   : > { %v318_v11 = vsel %vm312_vm2, %v317_v10, %v969_v6  ;;  %v722_v10 = vld [vmem:[%s1085_s6 + $0x8] sm:$0xff] }
 0x181   : > { %324 = vrot.lane.b32.xlu2 %v318_v11, %s866_s8  ;;  %332 = vrot.lane.b32.xlu1 %v318_v11, %s867_s9  ;;  %s634_s9 = sshll.u32 %s630_s23, 4  ;;  %s635_s9 = int_to_ptr.hbm [resolvable:$true] %s634_s9 }
 0x182   : > { %s814_s14 = sshra.s32 %s635_s9, 4  ;;  %s815_s14 = int_to_ptr.hbm [resolvable:$true] %s814_s14 }
 0x183   : > { %s816_s28 = scalar_lea.hbm %s815_s14, 8  ;;  %p821_p0 = scmp.lt.s32.totalorder %s815_s14, %s1086_s7 }
 0x184   : > { %p817_p11 = scmp.ne.s32.totalorder %s815_s14, %s816_s28  ;;  %p822_p1 = scmp.lt.s32.totalorder %s820_s17, %s816_s28 }
 0x186   : > { %p818_p12 = pnand %p817_p11, %p948_p5  ;;  %p823_p2 = por %p822_p1, %p821_p0 }
 0x188   : > { %p819_p13 = pneg %p818_p12 }
 0x189   : > { %349 = vperm.xlu1 %775, %v340_v14   ;;  %354 = vperm.xlu2 %774, %v341_v15   ;;  %v713_v14 = vld [vmem:[%s1083_s4 + $0x20] sm:$0xff]  ;;  %v712_v15 = vld [vmem:[%s1083_s4 + $0x18] sm:$0xff] }
 0x18a   : > { %p824_p3 = pnand %p823_p2, %p819_p13 }
 0x191   : > { %436 = vperm.xlu2 %774, %v433_v18   ;;  %v470_v18 = vadd.s32 4294967294, %v981_v13  ;;  %v711_v13 = vld [vmem:[%s1082_s3 + $0x28] sm:$0xff] }
 0x193   : > { %vm471_vm15 = vcmp.ge.s32.totalorder %v470_v18, 0  ;;  %vm472_vm0 = vcmp.lt.s32.totalorder %v470_v18, 16 }
 0x194   : > { %vm473_vm1 = vmand %vm471_vm15, %vm472_vm0 }
 0x1db   : > { %v325_v21 = vpop.permute.xlu2 %324 }
 0x1e3   : > { %v355_v30 = vpop.permute.xlu2 %354 }
 0x1eb   : > { %v437_v2 = vpop.permute.xlu2 %436 }
 0x1f3   : > { %v333_v19 = vpop.permute.xlu1 %332 }
 0x1f4   : > { %702 = vmatpush.msk.msra.mxu1 %vm330_vm3, %v333_v19  ;;  %v709_v19 = vld [vmem:[%s1082_s3 + $0x18] sm:$0xff] }
 0x1f6   : > { %381 = vmatpush.msra.mxu1 %v969_v6 }
 0x1f8   : > { %703 = vmatpush.msk.msra.mxu1 %vm322_vm6, %v325_v21  ;;  %v710_v21 = vld [vmem:[%s1082_s3 + $0x20] sm:$0xff] }
 0x1f9   : > { %704 = vmatmul.msk.f32.vlgmr.msra.gmra.mxu1 %vm357_vm7, %v336_v20 }
 0x1fb   : > { %v350_v44 = vpop.permute.xlu1 %349 }
 0x201   : > { %705 = vmatmul.msk.f32.gmra.mxu1 %vm357_vm7, %v337_v22 }
 0x209   : > { %706 = vmatmul.msk.f32.gmra.mxu1 %vm357_vm7, %v338_v23 }
 0x276   : > { %v384_v25 = vpop.f32.mrf.mxu1 }
 0x277   : > { %v385_v26 = vadd.f32 %v384_v25, %v345_v24 }
 0x279   : > { %v707_v27 = vmul.f32 -1.442695, %v385_v26 }
 0x27b   : > { %776 = vpow2.f32 %v707_v27 }
 0x27e   : > { %v387_v28 = vpop.f32.mrf.mxu1 }
 0x27f   : > { %v388_v48 = vadd.f32 %v387_v28, %v350_v44 }
 0x281   : > { %v777_v29 = vpop.eup %776 }
 0x282   : > { %v396_v33 = vadd.f32 1.0, %v777_v29 }
 0x284   : > { %778 = vrcp.f32 %v396_v33  ;;  %v408_v55 = vand.u32 2147483648, %v396_v33  ;;  %vm402_vm10 = vweird.f32 %v396_v33  ;;  %v406_v56 = vand.u32 2147483647, %v396_v33 }
 0x286   : > { %v390_v31 = vpop.f32.mrf.mxu1  ;;  %v409_v58 = vor.u32 1.1754944e-38, %v408_v55  ;;  %vm407_vm12 = vcmp.eq.f32.partialorder %v406_v56, 8.507059e+37 }
 0x287   : > { %v391_v32 = vadd.f32 %v390_v31, %v355_v30 }
 0x289   : > { %v415_v34 = vand.u32 2147483647, %v391_v32  ;;  %v414_v51 = vmax.f32 %v391_v32, 0.0 }
 0x28a   : > { %v779_v37 = vpop.eup %778 }
 0x28b   : > { %v416_v35 = vsub.f32 0.0, %v415_v34  ;;  %v398_v39 = vmul.f32 %v779_v37, %v396_v33  ;;  %vm403_vm9 = vweird.f32 %v779_v37 }
 0x28c   : > { %vm404_vm11 = vmor %vm402_vm10, %vm403_vm9 }
 0x28d   : > { %v417_v36 = vmul.f32 1.442695, %v416_v35  ;;  %v399_v42 = vsub.f32 1.0, %v398_v39 }
 0x28f   : > { %780 = vpow2.f32 %v417_v36  ;;  %v400_v46 = vmul.f32 %v779_v37, %v399_v42 }
 0x291   : > { %v401_v53 = vadd.f32 %v779_v37, %v400_v46 }
 0x293   : > { %v405_v57 = vsel %vm404_vm11, %v779_v37, %v401_v53 }
 0x294   : > { %v410_v59 = vsel %vm407_vm12, %v409_v58, %v405_v57 }
 0x295   : > { %v781_v38 = vpop.eup %780 }
 0x296   : > { %v419_v40 = vadd.f32 1.0, %v781_v38  ;;  %v422_v41 = vmul.f32 -0.5, %v781_v38  ;;  %v425_v45 = vand.u32 2147483647, %v781_v38 }
 0x298   : > { %782 = vlog2.f32 %v419_v40  ;;  %v423_v43 = vadd.f32 1.0, %v422_v41  ;;  %vm426_vm8 = vcmp.lt.f32.partialorder %v425_v45, 0.0004427343 }
 0x299   : > { %784 = vtanh.f32 %v388_v48 }
 0x29a   : > { %v424_v50 = vmul.f32 %v781_v38, %v423_v43 }
 0x29e   : > { %v783_v47 = vpop.eup %782 }
 0x29f   : > { %v421_v49 = vmul.f32 0.6931472, %v783_v47  ;;  %v785_v60 = vpop.eup %784 }
 0x2a0   : > { %v413_v62 = vmul.f32 %v785_v60, %v410_v59 }
 0x2a1   : > { %v427_v52 = vsel %vm426_vm8, %v424_v50, %v421_v49 }
 0x2a2   : > { %v428_v54 = vadd.f32 %v427_v52, %v414_v51 }
 0x2a4   : > { %786 = vtanh.f32 %v428_v54 }
 0x2aa   : > { %v787_v61 = vpop.eup %786 }
 0x2ab   : > { %v430_v63 = vmul.f32 %v787_v61, %v391_v32 }
 0x2ad   : > { %v431_v0 = vmul.f32 %v430_v63, %v413_v62  ;;  %v721_v63 = vld [vmem:[%s1084_s5 + $0x8] sm:$0xff] }
 0x2af   : > { %458 = vmatpush.msra.mxu2 %v431_v0 }
 0x2b0   : > { %708 = vmatmul.msk.f32.vlgmr.msra.gmra.mxu2 %vm439_vm13, %v432_v1 }
 0x333   : > { %v460_v3 = vpop.f32.mrf.mxu2 }
 0x334   : > { %v461_v4 = vadd.f32 %v460_v3, %v437_v2 }
 0x336   : > { %v463_v5 = vadd.f32 %v461_v4, %v969_v6 }
 0x338   : > { %464 = vrot.lane.b32.xlu0 %v463_v5, %s865_s22 }
 0x3aa   : > { %v465_v7 = vpop.permute.xlu0 %464 }
 0x3ab   : > { %v466_v8 = vsel %vm312_vm2, %v465_v7, %v463_v5 }
 0x3ac   : > { %467 = vrot.lane.b32.xlu1 %v466_v8, %s865_s22 }
 0x3b4   : > { %507 = vperm.xlu1 %775, %v714_v9  }
 0x3bc   : > { %590 = vperm.xlu1 %775, %v722_v10  }
 0x41e   : > { %v468_v11 = vpop.permute.xlu1 %467 }
 0x41f   : > { %v469_v12 = vsel %vm312_vm2, %v468_v11, %v463_v5 }
 0x420   : > { %475 = vrot.lane.b32.xlu0 %v469_v12, %s868_s18  ;;  %483 = vrot.lane.b32.xlu2 %v469_v12, %s869_s19  ;;  %s267_s18 = sand.u32 1, %s854_s25  }
 0x421   : > { %s698_s19 = sshll.u32 %s267_s18, 3  ;;  %s620_s13 = scalar_lea.sflag [#allocation3], %s267_s18 }
 0x422   : > { %s269_s29 = scalar_lea.vmem [#allocation2], %s698_s19 }
 0x423   : > { %s632_s8 = sshll.u32 %s269_s29, 4  ;;  %s633_s8 = int_to_ptr.vmem [resolvable:$true] %s632_s8 }
 0x426   : > { %v508_v28 = vpop.permute.xlu1 %507 }
 0x428   : > { %502 = vperm.xlu0 %773, %v713_v14   ;;  %497 = vperm.xlu2 %774, %v712_v15  }
 0x42e   : > { %v591_v0 = vpop.permute.xlu1 %590 }
 0x47a   : > { %v484_v17 = vpop.permute.xlu2 %483 }
 0x47b   : > { %715 = vmatpush.msk.msra.mxu3 %vm481_vm14, %v484_v17 }
 0x47d   : > { %533 = vmatpush.msra.mxu3 %v463_v5 }
 0x482   : > { %v498_v22 = vpop.permute.xlu2 %497 }
 0x492   : > { %v476_v20 = vpop.permute.xlu0 %475 }
 0x493   : > { %716 = vmatpush.msk.msra.mxu3 %vm473_vm1, %v476_v20 }
 0x494   : > { %717 = vmatmul.msk.f32.vlgmr.msra.gmra.mxu3 %vm357_vm7, %v709_v19 }
 0x49a   : > { %v503_v45 = vpop.permute.xlu0 %502 }
 0x49c   : > { %718 = vmatmul.msk.f32.gmra.mxu3 %vm357_vm7, %v710_v21 }
 0x4a4   : > { %719 = vmatmul.msk.f32.gmra.mxu3 %vm357_vm7, %v711_v13  ;;  %vm617_vm7 = vcmask 130048  }
 0x517   : > { %v536_v23 = vpop.f32.mrf.mxu3 }
 0x518   : > { %v537_v24 = vadd.f32 %v536_v23, %v498_v22 }
 0x51a   : > { %v720_v25 = vmul.f32 -1.442695, %v537_v24 }
 0x51c   : > { %788 = vpow2.f32 %v720_v25 }
 0x51f   : > { %v539_v26 = vpop.f32.mrf.mxu3 }
 0x520   : > { %v540_v46 = vadd.f32 %v539_v26, %v503_v45 }
 0x522   : > { %v789_v27 = vpop.eup %788 }
 0x523   : > { %v548_v31 = vadd.f32 1.0, %v789_v27 }
 0x525   : > { %790 = vrcp.f32 %v548_v31  ;;  %v560_v53 = vand.u32 2147483648, %v548_v31  ;;  %vm554_vm4 = vweird.f32 %v548_v31  ;;  %v558_v54 = vand.u32 2147483647, %v548_v31 }
 0x527   : > { %v542_v29 = vpop.f32.mrf.mxu3  ;;  %v561_v56 = vor.u32 1.1754944e-38, %v560_v53  ;;  %vm559_vm6 = vcmp.eq.f32.partialorder %v558_v54, 8.507059e+37 }
 0x528   : > { %v543_v30 = vadd.f32 %v542_v29, %v508_v28 }
 0x52a   : > { %v567_v32 = vand.u32 2147483647, %v543_v30  ;;  %v566_v49 = vmax.f32 %v543_v30, 0.0 }
 0x52b   : > { %v791_v35 = vpop.eup %790 }
 0x52c   : > { %v568_v33 = vsub.f32 0.0, %v567_v32  ;;  %v550_v37 = vmul.f32 %v791_v35, %v548_v31  ;;  %vm555_vm3 = vweird.f32 %v791_v35 }
 0x52d   : > { %vm556_vm5 = vmor %vm554_vm4, %vm555_vm3 }
 0x52e   : > { %v569_v34 = vmul.f32 1.442695, %v568_v33  ;;  %v551_v40 = vsub.f32 1.0, %v550_v37 }
 0x530   : > { %792 = vpow2.f32 %v569_v34  ;;  %v552_v43 = vmul.f32 %v791_v35, %v551_v40 }
 0x532   : > { %v553_v51 = vadd.f32 %v791_v35, %v552_v43 }
 0x534   : > { %v557_v55 = vsel %vm556_vm5, %v791_v35, %v553_v51 }
 0x535   : > { %v562_v57 = vsel %vm559_vm6, %v561_v56, %v557_v55 }
 0x536   : > { %v793_v36 = vpop.eup %792 }
 0x537   : > { %v571_v38 = vadd.f32 1.0, %v793_v36  ;;  %v574_v39 = vmul.f32 -0.5, %v793_v36  ;;  %v577_v42 = vand.u32 2147483647, %v793_v36 }
 0x539   : > { %794 = vlog2.f32 %v571_v38  ;;  %v575_v41 = vadd.f32 1.0, %v574_v39  ;;  %vm578_vm2 = vcmp.lt.f32.partialorder %v577_v42, 0.0004427343 }
 0x53a   : > { %796 = vtanh.f32 %v540_v46 }
 0x53b   : > { %v576_v48 = vmul.f32 %v793_v36, %v575_v41 }
 0x53f   : > { %v795_v44 = vpop.eup %794 }
 0x540   : > { %v573_v47 = vmul.f32 0.6931472, %v795_v44  ;;  %v797_v58 = vpop.eup %796 }
 0x541   : > { %v565_v60 = vmul.f32 %v797_v58, %v562_v57 }
 0x542   : > { %v579_v50 = vsel %vm578_vm2, %v576_v48, %v573_v47 }
 0x543   : > { %v580_v52 = vadd.f32 %v579_v50, %v566_v49 }
 0x545   : > { %798 = vtanh.f32 %v580_v52 }
 0x54b   : > { %v799_v59 = vpop.eup %798 }
 0x54c   : > { %v582_v61 = vmul.f32 %v799_v59, %v543_v30 }
 0x54e   : > { %v583_v62 = vmul.f32 %v582_v61, %v565_v60 }
 0x550   : > { %611 = vmatpush.msrb.mxu0 %v583_v62 }
 0x551   : > { %723 = vmatmul.msk.f32.vlgmr.msrb.gmra.mxu0 %vm439_vm13, %v721_v63 }
 0x5ce   : > { %v613_v1 = vpop.f32.mrf.mxu0 }
 0x5cf   : > { %v614_v2 = vadd.f32 %v613_v1, %v591_v0 }
 0x5d1   : > { %v616_v3 = vadd.f32 %v614_v2, %v969_v6 }
 0x5d3   : > { %618 = vst.msk [vmem:[%s269_s29] sm:$0xff] %vm617_vm7, %v616_v3 }
 0x5d4   : > { %827 = shalt.err (!%p824_p3)
}
 0x5d5   : > { %728 = dma.vmem_to_hbm [thread:$0]  (%p948_p5), %s633_s8, 128, %s635_s9, %s620_s13  }
 0x5d6 PF: > { %p734_p4 = scmp.ge.s32.totalorder %s862_s27, 2  ;;  %s646_s18 = sand.u32 1, %s850_s24  }
 0x5d7   : > { %s647_s21 = scalar_lea.sflag [#allocation3], %s646_s18 }
 0x5d8   : > { %p731_p7 = pnand %p734_p4, %p952_p6 }
 0x5da   : > { %p732_p8 = pneg %p731_p7 }
 0x5dc   : > { %845 = dma.done.wait (%p732_p8), %s647_s21, 128  }
 0x5dd   : > { %847 = vsyncadd (%p732_p8), %s647_s21, 4294967168  ;;  %p17_p9 = scmp.ge.s32.totalorder %s935_s30, 4   ;;  %s1089_s24 = smov %s854_s25 }
 0x5de   : > { %s1090_s25 = smov %s858_s26  ;;  %s1091_s26 = smov %s946_s10 }
 0x5df   : > { %s1092_s27 = smov %s935_s30  ;;  %19 = sbr.rel (!%p17_p9) target bundleno = 3 (0x3), region = 87 }
 0x5e4   :  { %653 = vsyncpa [#allocation3], 1 }
 0x5e5   :  { %655 = vsyncpa [#allocation3 + $0x1], 1 }

</bundles_post_ra>
